<compile_context>
chip_gen: v7x
topology: tpu7x:2x2x1
jax: 0.10.0
libtpu: 0.0.40
codegen_flags: <defaults>
</compile_context>

<pallas_src>
from typing import NamedTuple

import jax
import jax.numpy as jnp
from jax.experimental import pallas as pl
from jax.experimental.pallas import tpu as pltpu


def _round_up(x, m):
    return ((x + m - 1) // m) * m


def _tpu_info():
    """Best-effort chip generation / VMEM capacity / core-count query."""
    kind = ""
    try:
        kind = jax.devices()[0].device_kind.lower()
    except Exception:
        pass
    vmem = None
    try:
        vmem = int(pltpu.get_tpu_info().vmem_capacity_bytes)
    except Exception:
        vmem = None
    if "v7" in kind:
        gen = "v7x"
    elif "v6" in kind or "trillium" in kind:
        gen = "v6e"
    elif "v5" in kind:
        gen = "v5e"
    else:
        gen = "unknown"
    if vmem is None:
        vmem = 64 * 1024 * 1024 if gen == "v7x" else 128 * 1024 * 1024
    two_tc = gen == "v7x"
    return gen, vmem, two_tc


# ---------------------------------------------------------------------------
# Kernels
# ---------------------------------------------------------------------------
def mlp_kernel_f32out(x_ref, w1_ref, b1_ref, w2_ref, b2_ref, o_ref):
    # grid = (M_p // tm, H_p // tk); hidden (reduction) axis is LAST and "arbitrary".
    # f32 output: accumulate directly into the resident output block (no VMEM scratch).
    k = pl.program_id(1)

    @pl.when(k == 0)
    def _():
        o_ref[...] = jnp.zeros_like(o_ref)

    # fc1 on this hidden block: (tm, in) @ (in, tk) -> f32.
    h = jnp.dot(x_ref[...], w1_ref[...], preferred_element_type=jnp.float32)
    h = jnp.maximum(h + b1_ref[...], 0.0)          # bias + ReLU; dropout p=0 -> identity
    # fc2 partial product, f32 accumulation into the output block.
    o_ref[...] += jnp.dot(h.astype(w2_ref.dtype), w2_ref[...],
                          preferred_element_type=jnp.float32)

    @pl.when(k == pl.num_programs(1) - 1)
    def _():
        o_ref[...] += b2_ref[...]


def mlp_kernel_acc(x_ref, w1_ref, b1_ref, w2_ref, b2_ref, o_ref, acc_ref):
    # Variant with an f32 scratch accumulator (used for non-f32 output dtypes).
    k = pl.program_id(1)

    @pl.when(k == 0)
    def _():
        acc_ref[...] = jnp.zeros_like(acc_ref)

    h = jnp.dot(x_ref[...], w1_ref[...], preferred_element_type=jnp.float32)
    h = jnp.maximum(h + b1_ref[...], 0.0)
    acc_ref[...] += jnp.dot(h.astype(w2_ref.dtype), w2_ref[...],
                            preferred_element_type=jnp.float32)

    @pl.when(k == pl.num_programs(1) - 1)
    def _():
        o_ref[...] = (acc_ref[...] + b2_ref[...]).astype(o_ref.dtype)


# ---------------------------------------------------------------------------
# Parameter preparation (done ONCE, outside the hot path)
# ---------------------------------------------------------------------------
class PreparedMlp(NamedTuple):
    w1_p: jax.Array        # [in, H_p]   compute dtype
    b1_p: jax.Array        # [1, H_p]    f32
    w2_p: jax.Array        # [H_p, N_p]  compute dtype
    b2_p: jax.Array        # [1, N_p]    f32
    in_features: int
    hidden: int
    out_features: int
    H_p: int
    N_p: int
    tk: int
    compute_dtype: object


def prepare_mlp_params(w1, b1, w2, b2, *, compute_dtype=jnp.bfloat16, tk=None):
    """Pre-transpose / pad / cast weights once (PyTorch nn.Linear layout in)."""
    hidden, in_features = w1.shape
    out_features = w2.shape[0]
    gen, vmem_cap, _ = _tpu_info()
    cbytes = jnp.dtype(compute_dtype).itemsize

    if tk is None:
        tk = 256 if gen == "v7x" else 512
    tk = min(_round_up(tk, 128), _round_up(hidden, 128))

    # Lane-dense output slab; multiple of 256 fills the v6e/v7x MXU output dimension.
    N_p = _round_up(out_features, 256)

    # Shrink tk until a nominal tile footprint fits the per-generation VMEM budget.
    tm_nominal = 512 if gen == "v6e" else 256
    budget = int(0.85 * vmem_cap)

    def footprint(tm_, tk_):
        return (2 * tm_ * in_features * cbytes       # x tile (double-buffered)
                + 2 * in_features * tk_ * cbytes     # W1 block
                + 2 * tk_ * N_p * cbytes             # W2 block
                + 2 * tm_ * N_p * 4                  # output tile (f32)
                + 2 * 8 * (tk_ + N_p) * 4            # biases (sublane-padded)
                + tm_ * N_p * 4)                     # worst case: f32 scratch acc

    while footprint(tm_nominal, tk) > budget and tk > 128:
        tk = max(128, (tk // 2 // 128) * 128)

    H_p = _round_up(hidden, tk)

    # Zero padding is exact: padded hidden units give relu(0 + 0) = 0 and padded
    # W2 rows/cols contribute 0 to (later sliced-off) output columns.
    w1_p = jnp.pad(w1.T.astype(compute_dtype), ((0, 0), (0, H_p - hidden)))
    b1_p = jnp.pad(b1.astype(jnp.float32), (0, H_p - hidden)).reshape(1, H_p)
    w2_p = jnp.pad(w2.T.astype(compute_dtype),
                   ((0, H_p - hidden), (0, N_p - out_features)))
    b2_p = jnp.pad(b2.astype(jnp.float32), (0, N_p - out_features)).reshape(1, N_p)

    return PreparedMlp(w1_p, b1_p, w2_p, b2_p, in_features, hidden, out_features,
                       H_p, N_p, tk, compute_dtype)


# ---------------------------------------------------------------------------
# Forward
# ---------------------------------------------------------------------------
def mlp_pallas(x, params: PreparedMlp, *, tm=None):
    """Fused MLP forward. x: [M, in_features]; returns [M, out_features] in x.dtype."""
    M, in_features = x.shape
    assert in_features == params.in_features
    gen, vmem_cap, two_tc = _tpu_info()

    cdt = params.compute_dtype
    out_dtype = x.dtype
    cbytes = jnp.dtype(cdt).itemsize
    obytes = jnp.dtype(out_dtype).itemsize
    tk, H_p, N_p = params.tk, params.H_p, params.N_p

    # Row-tile selection (multiple of 16 for bf16 sublane packing).
    if tm is None:
        tm = 512 if gen == "v6e" else 256
    tm = min(_round_up(tm, 16), _round_up(M, 16))
    # v7x: make sure both TensorCores get at least one M tile.
    if two_tc and _round_up(M, tm) // tm < 2 and M > 16:
        tm = _round_up(max(16, (M + 1) // 2), 16)

    use_scratch = out_dtype != jnp.float32

    def footprint(tm_):
        f = (2 * tm_ * in_features * cbytes
             + 2 * in_features * tk * cbytes
             + 2 * tk * N_p * cbytes
             + 2 * tm_ * N_p * obytes
             + 2 * 8 * (tk + N_p) * 4)
        if use_scratch:
            f += tm_ * N_p * 4
        return f

    budget = int(0.85 * vmem_cap)
    while footprint(tm) > budget and tm > 16:
        tm = max(16, _round_up(tm // 2, 16))

    M_p = _round_up(M, tm)
    x_p = jnp.pad(x, ((0, M_p - M), (0, 0))).astype(cdt)

    grid = (M_p // tm, H_p // tk)

    # Accurate VMEM request (footprint already includes the double-buffer factors),
    # clamped to the chip's physical capacity.
    vmem_limit = int(min(0.9 * vmem_cap,
                         max(32 * 1024 * 1024, footprint(tm) * 1.2 + (1 << 20))))

    flops = 2 * M_p * (in_features * H_p + H_p * N_p)
    bytes_accessed = (M_p * in_features * cbytes                 # x read
                      + M_p * N_p * obytes                       # out write
                      + grid[0] * (in_features * H_p + H_p * N_p) * cbytes  # weights
                      + (H_p + N_p) * 4)                         # biases
    cost = pl.CostEstimate(flops=int(flops), transcendentals=0,
                           bytes_accessed=int(bytes_accessed))

    in_specs = [
        pl.BlockSpec((tm, in_features), lambda i, k: (i, 0)),   # x
        pl.BlockSpec((in_features, tk), lambda i, k: (0, k)),   # W1 (in, hid)
        pl.BlockSpec((1, tk), lambda i, k: (0, k)),             # b1
        pl.BlockSpec((tk, N_p), lambda i, k: (k, 0)),           # W2 (hid, out)
        pl.BlockSpec((1, N_p), lambda i, k: (0, 0)),            # b2
    ]
    out_spec = pl.BlockSpec((tm, N_p), lambda i, k: (i, 0))

    if use_scratch:
        kernel = mlp_kernel_acc
        scratch = [pltpu.VMEM((tm, N_p), jnp.float32)]
    else:
        kernel = mlp_kernel_f32out
        scratch = []

    out_p = pl.pallas_call(
        kernel,
        out_shape=jax.ShapeDtypeStruct((M_p, N_p), out_dtype),
        grid_spec=pltpu.PrefetchScalarGridSpec(
            num_scalar_prefetch=0,
            grid=grid,
            in_specs=in_specs,
            out_specs=out_spec,
            scratch_shapes=scratch,
        ),
        compiler_params=pltpu.CompilerParams(
            dimension_semantics=("parallel", "arbitrary"),
            vmem_limit_bytes=vmem_limit,
        ),
        cost_estimate=cost,
    )(x_p, params.w1_p, params.b1_p, params.w2_p, params.b2_p)

    return out_p[:M, :params.out_features]


def mlp_apply(x, params: PreparedMlp, **kw):
    """Accepts arbitrary leading dims like the PyTorch module."""
    lead = x.shape[:-1]
    out = mlp_pallas(x.reshape(-1, x.shape[-1]), params, **kw)
    return out.reshape(*lead, out.shape[-1])


# ---------------------------------------------------------------------------
# References
# ---------------------------------------------------------------------------
def mlp_reference_f32(x, w1, b1, w2, b2):
    h = jnp.maximum(x @ w1.T + b1, 0.0)
    return h @ w2.T + b2


def mlp_reference_bf16(x, w1, b1, w2, b2):
    # Mirrors the kernel's bf16-operand / f32-accumulate numerics.
    xb, w1b, w2b = (t.astype(jnp.bfloat16) for t in (x, w1, w2))
    h = jnp.dot(xb, w1b.T, preferred_element_type=jnp.float32) + b1
    h = jnp.maximum(h, 0.0).astype(jnp.bfloat16)
    return jnp.dot(h, w2b.T, preferred_element_type=jnp.float32) + b2


if __name__ == "__main__":
    key = jax.random.PRNGKey(0)
    k_x, k_w1, k_b1, k_w2, k_b2 = jax.random.split(key, 5)

    # Small shapes consistent with the module: batch=2, seq=8, in=32, hidden=64, out=32
    B, S, in_features, hidden, out_features = 2, 8, 32, 64, 32

    x = jax.random.normal(k_x, (B, S, in_features), dtype=jnp.float32)
    lim1 = 1.0 / (in_features ** 0.5)
    lim2 = 1.0 / (hidden ** 0.5)
    w1 = jax.random.uniform(k_w1, (hidden, in_features), minval=-lim1, maxval=lim1)
    b1 = jax.random.uniform(k_b1, (hidden,), minval=-lim1, maxval=lim1)
    w2 = jax.random.uniform(k_w2, (out_features, hidden), minval=-lim2, maxval=lim2)
    b2 = jax.random.uniform(k_b2, (out_features,), minval=-lim2, maxval=lim2)

    # Weight prep (transpose / pad / bf16 cast) happens once, outside the hot path.
    params = prepare_mlp_params(w1, b1, w2, b2)

    out = mlp_apply(x, params)
    out = jax.block_until_ready(out)
    assert out.shape == (B, S, out_features)

    x2 = x.reshape(-1, in_features)
    ref_bf16 = mlp_reference_bf16(x2, w1, b1, w2, b2).reshape(B, S, out_features)
    ref_f32 = mlp_reference_f32(x2, w1, b1, w2, b2).reshape(B, S, out_features)

    assert jnp.allclose(out, ref_bf16, atol=1e-4, rtol=1e-4), "mismatch vs bf16 reference"
    assert jnp.allclose(out, ref_f32, atol=2e-2, rtol=2e-2), "mismatch vs f32 reference"

    print("KERNEL_OK")
</pallas_src>

<mosaic_0001>
module attributes {stable_mosaic.version = 11 : i64} {
  func.func @mlp_kernel_f32out(%arg0: i32, %arg1: i32, %arg2: memref<16x32xbf16, #tpu.memory_space<vmem>>, %arg3: memref<32x128xbf16, #tpu.memory_space<vmem>>, %arg4: memref<1x128xf32, #tpu.memory_space<vmem>>, %arg5: memref<128x256xbf16, #tpu.memory_space<vmem>>, %arg6: memref<1x256xf32, #tpu.memory_space<vmem>>, %arg7: memref<16x256xf32, #tpu.memory_space<vmem>>) attributes {dimension_semantics = [#tpu.dimension_semantics<parallel>, #tpu.dimension_semantics<arbitrary>], iteration_bounds = array<i64: 1, 1>, scalar_prefetch = 0 : i64, scratch_operands = 0 : i64, tpu.core_type = #tpu.core_type<tc>, window_params = [{transform_indices = @transform_0, window_bounds = array<i64: 16, 32>}, {transform_indices = @transform_1, window_bounds = array<i64: 32, 128>}, {transform_indices = @transform_2, window_bounds = array<i64: 1, 128>}, {transform_indices = @transform_3, window_bounds = array<i64: 128, 256>}, {pipeline_mode = #tpu.pipeline_mode<synchronous>, transform_indices = @transform_4, window_bounds = array<i64: 1, 256>}, {transform_indices = @transform_5, window_bounds = array<i64: 16, 256>}]} {
    %c0_i32 = arith.constant 0 : i32
    %0 = arith.cmpi eq, %arg1, %c0_i32 : i32
    %1 = arith.extui %0 : i1 to i32
    %c0_i32_0 = arith.constant 0 : i32
    %2 = arith.cmpi ne, %1, %c0_i32_0 : i32
    scf.if %2 {
      %cst_16 = arith.constant 0.000000e+00 : f32
      %20 = vector.broadcast %cst_16 : f32 to vector<16x256xf32>
      %c0_17 = arith.constant 0 : index
      %c0_18 = arith.constant 0 : index
      %21 = vector.load %arg7[%c0_17, %c0_18] : memref<16x256xf32, #tpu.memory_space<vmem>>, vector<16x256xf32>
      tpu.vector_store %arg7[%c0_17, %c0_18], %20 {strides = array<i32>} : memref<16x256xf32, #tpu.memory_space<vmem>>, vector<16x256xf32>,
    } else {
    }
    %c0 = arith.constant 0 : index
    %c0_1 = arith.constant 0 : index
    %3 = vector.load %arg2[%c0, %c0_1] : memref<16x32xbf16, #tpu.memory_space<vmem>>, vector<16x32xbf16>
    %c0_2 = arith.constant 0 : index
    %c0_3 = arith.constant 0 : index
    %4 = vector.load %arg3[%c0_2, %c0_3] : memref<32x128xbf16, #tpu.memory_space<vmem>>, vector<32x128xbf16>
    %cst = arith.constant dense<0.000000e+00> : vector<16x128xf32>
    %5 = tpu.matmul %3, %4, %cst {dimension_numbers = #tpu.dot_dimension_numbers<[1], [0], [0], [1], [0, 0, 1, 1], [], []>} : vector<16x32xbf16>, vector<32x128xbf16>, vector<16x128xf32> -> vector<16x128xf32>
    %c0_4 = arith.constant 0 : index
    %c0_5 = arith.constant 0 : index
    %6 = vector.load %arg4[%c0_4, %c0_5] : memref<1x128xf32, #tpu.memory_space<vmem>>, vector<1x128xf32>
    %7 = vector.broadcast %6 : vector<1x128xf32> to vector<16x128xf32>
    %8 = arith.addf %5, %7 : vector<16x128xf32>
    %cst_6 = arith.constant 0.000000e+00 : f32
    %9 = vector.broadcast %cst_6 : f32 to vector<16x128xf32>
    %10 = arith.maximumf %8, %9 : vector<16x128xf32>
    %c0_7 = arith.constant 0 : index
    %c0_8 = arith.constant 0 : index
    %11 = vector.load %arg7[%c0_7, %c0_8] : memref<16x256xf32, #tpu.memory_space<vmem>>, vector<16x256xf32>
    %12 = arith.truncf %10 : vector<16x128xf32> to vector<16x128xbf16>
    %c0_9 = arith.constant 0 : index
    %c0_10 = arith.constant 0 : index
    %13 = vector.load %arg5[%c0_9, %c0_10] : memref<128x256xbf16, #tpu.memory_space<vmem>>, vector<128x256xbf16>
    %cst_11 = arith.constant dense<0.000000e+00> : vector<16x256xf32>
    %14 = tpu.matmul %12, %13, %cst_11 {dimension_numbers = #tpu.dot_dimension_numbers<[1], [0], [0], [1], [0, 0, 1, 1], [], []>} : vector<16x128xbf16>, vector<128x256xbf16>, vector<16x256xf32> -> vector<16x256xf32>
    %15 = arith.addf %11, %14 : vector<16x256xf32>
    %c0_12 = arith.constant 0 : index
    %c0_13 = arith.constant 0 : index
    %16 = vector.load %arg7[%c0_12, %c0_13] : memref<16x256xf32, #tpu.memory_space<vmem>>, vector<16x256xf32>
    tpu.vector_store %arg7[%c0_12, %c0_13], %15 {strides = array<i32>} : memref<16x256xf32, #tpu.memory_space<vmem>>, vector<16x256xf32>,
    %c0_i32_14 = arith.constant 0 : i32
    %17 = arith.cmpi eq, %arg1, %c0_i32_14 : i32
    %18 = arith.extui %17 : i1 to i32
    %c0_i32_15 = arith.constant 0 : i32
    %19 = arith.cmpi ne, %18, %c0_i32_15 : i32
    scf.if %19 {
      %c0_16 = arith.constant 0 : index
      %c0_17 = arith.constant 0 : index
      %20 = vector.load %arg7[%c0_16, %c0_17] : memref<16x256xf32, #tpu.memory_space<vmem>>, vector<16x256xf32>
      %c0_18 = arith.constant 0 : index
      %c0_19 = arith.constant 0 : index
      %21 = vector.load %arg6[%c0_18, %c0_19] : memref<1x256xf32, #tpu.memory_space<vmem>>, vector<1x256xf32>
      %22 = vector.broadcast %21 : vector<1x256xf32> to vector<16x256xf32>
      %23 = arith.addf %20, %22 : vector<16x256xf32>
      %c0_20 = arith.constant 0 : index
      %c0_21 = arith.constant 0 : index
      %24 = vector.load %arg7[%c0_20, %c0_21] : memref<16x256xf32, #tpu.memory_space<vmem>>, vector<16x256xf32>
      tpu.vector_store %arg7[%c0_20, %c0_21], %23 {strides = array<i32>} : memref<16x256xf32, #tpu.memory_space<vmem>>, vector<16x256xf32>,
    } else {
    }
    return
  }
  func.func @transform_0(%arg0: i32, %arg1: i32) -> (i32, i32) {
    %c0_i32 = arith.constant 0 : i32
    %c0_i32_0 = arith.constant 0 : i32
    return %arg0, %c0_i32 : i32, i32
  }
  func.func @transform_1(%arg0: i32, %arg1: i32) -> (i32, i32) {
    %c0_i32 = arith.constant 0 : i32
    %c0_i32_0 = arith.constant 0 : i32
    return %c0_i32, %arg1 : i32, i32
  }
  func.func @transform_2(%arg0: i32, %arg1: i32) -> (i32, i32) {
    %c0_i32 = arith.constant 0 : i32
    %c0_i32_0 = arith.constant 0 : i32
    return %c0_i32, %arg1 : i32, i32
  }
  func.func @transform_3(%arg0: i32, %arg1: i32) -> (i32, i32) {
    %c0_i32 = arith.constant 0 : i32
    %c0_i32_0 = arith.constant 0 : i32
    return %arg1, %c0_i32 : i32, i32
  }
  func.func @transform_4(%arg0: i32, %arg1: i32) -> (i32, i32) {
    %c0_i32 = arith.constant 0 : i32
    %c0_i32_0 = arith.constant 0 : i32
    %c0_i32_1 = arith.constant 0 : i32
    return %c0_i32, %c0_i32_0 : i32, i32
  }
  func.func @transform_5(%arg0: i32, %arg1: i32) -> (i32, i32) {
    %c0_i32 = arith.constant 0 : i32
    %c0_i32_0 = arith.constant 0 : i32
    return %arg0, %c0_i32 : i32, i32
  }
}

</mosaic_0001>

<bundles_post_ra>
// kernel: tpu_custom_call.1
= control target key start
LH: loop header
LB: loop body
LE: loop exit
PB: predicated region body
PF: predicated region fallthrough
CT: control target
= control target key end

     0   :  { %10 = vsyncpa [#allocation3], 0  ;;  %s615_s0 = inlined_call_operand.hbm [shape: bf16[16,32], index: 0, kind: input, shape index: {}]   ;;  %s616_s1 = inlined_call_operand.hbm [shape: bf16[32,128], index: 1, kind: input, shape index: {}]   ;;  %s617_s2 = inlined_call_operand.vmem [shape: f32[1,128], index: 2, kind: input, shape index: {}]   ;;  %s618_s3 = inlined_call_operand.hbm [shape: bf16[128,256], index: 3, kind: input, shape index: {}]   ;;  %s619_s4 = inlined_call_operand.vmem [shape: f32[1,256], index: 4, kind: input, shape index: {}]   ;;  %s620_s5 = inlined_call_operand.hbm [shape: f32[16,256], index: 5, kind: output, shape index: {}]  }
   0x1   :  { %11 = vsyncpa [#allocation6], 0 }
   0x2   :  { %12 = vsyncpa [#allocation4], 0  ;;  %s511_s18 = smov [#allocation5]   ;;  %s512_s20 = smov [#allocation2]  }
   0x3   :  { %s30_s19 = sshll.u32 %s511_s18, 4  ;;  %s18_s21 = sshll.u32 %s512_s20, 4  ;;  %s31_s19 = int_to_ptr.vmem [resolvable:$true] %s30_s19  ;;  %s554_s21 = int_to_ptr.vmem [resolvable:$true] %s18_s21 }
   0x4   :  { %s417_s24 = scalar_lea.hbm %s616_s1, 256 }
   0x5   :  { %p418_p0 = scmp.ne.s32.totalorder %s616_s1, %s417_s24  ;;  %p421_p1 = scmp.lt.u32.totalorder %s417_s24, %s616_s1 }
   0x7   :  { %p423_p2 = pnand %p421_p1, %p418_p0 }
   0x9   :  { %426 = shalt.err (!%p423_p2)
}
   0xa   :  { %s427_s29 = scalar_lea.vmem %s31_s19, 256  ;;  %p432_p4 = scmp.lt.s32.totalorder %s31_s19, %s31_s19 }
   0xb   :  { %p428_p3 = scmp.ne.s32.totalorder %s31_s19, %s427_s29  ;;  %p433_p5 = scmp.lt.s32.totalorder %s427_s29, %s427_s29 }
   0xd   :  { %p434_p6 = por %p433_p5, %p432_p4 }
   0xf   :  { %p435_p7 = pnand %p434_p6, %p428_p3 }
  0x11   :  { %438 = shalt.err (!%p435_p7)
}
  0x12   :  { %s513_s30 = smov 64   ;;  %s514_s6 = smov 4  }
  0x13   :  { %36 = dma.hbm_to_vmem [thread:$0]  %s616_s1, 256, %s31_s19, [#allocation6], %s513_s30, %s513_s30, %s514_s6  }
  0x14   :  { %s439_s11 = scalar_lea.hbm %s615_s0, 128 }
  0x15   :  { %p440_p8 = scmp.ne.s32.totalorder %s615_s0, %s439_s11  ;;  %p443_p9 = scmp.lt.u32.totalorder %s439_s11, %s615_s0 }
  0x17   :  { %p445_p10 = pnand %p443_p9, %p440_p8 }
  0x19   :  { %448 = shalt.err (!%p445_p10)
}
  0x1a   :  { %s449_s16 = scalar_lea.vmem %s554_s21, 128  ;;  %p454_p12 = scmp.lt.s32.totalorder %s554_s21, %s554_s21 }
  0x1b   :  { %p450_p11 = scmp.ne.s32.totalorder %s554_s21, %s449_s16  ;;  %p455_p13 = scmp.lt.s32.totalorder %s449_s16, %s449_s16 }
  0x1d   :  { %p456_p0 = por %p455_p13, %p454_p12 }
  0x1f   :  { %p457_p1 = pnand %p456_p0, %p450_p11 }
  0x21   :  { %460 = shalt.err (!%p457_p1)
}
  0x22   :  { %24 = dma.hbm_to_vmem [thread:$0]  %s615_s0, 128, %s554_s21, [#allocation3], %s513_s30, %s513_s30, %s514_s6  }
  0x23   :  { %s515_s18 = smov [#allocation7]   ;;  %s461_s23 = scalar_lea.hbm %s618_s3, 2048 }
  0x24   :  { %s44_s19 = sshll.u32 %s515_s18, 4  ;;  %p462_p2 = scmp.ne.s32.totalorder %s618_s3, %s461_s23  ;;  %s45_s19 = int_to_ptr.vmem [resolvable:$true] %s44_s19 }
  0x25   :  { %p465_p3 = scmp.lt.u32.totalorder %s461_s23, %s618_s3 }
  0x27   :  { %p467_p4 = pnand %p465_p3, %p462_p2 }
  0x29   :  { %470 = shalt.err (!%p467_p4)
}
  0x2a   :  { %s471_s28 = scalar_lea.vmem %s45_s19, 2048  ;;  %p476_p6 = scmp.lt.s32.totalorder %s45_s19, %s45_s19 }
  0x2b   :  { %p472_p5 = scmp.ne.s32.totalorder %s45_s19, %s471_s28  ;;  %p477_p7 = scmp.lt.s32.totalorder %s471_s28, %s471_s28 }
  0x2d   :  { %p478_p8 = por %p477_p7, %p476_p6 }
  0x2f   :  { %p479_p9 = pnand %p478_p8, %p472_p5 }
  0x31   :  { %482 = shalt.err (!%p479_p9)
}
  0x32   :  { %s516_s0 = smov 128   ;;  %s517_s21 = smov 8  }
  0x33   :  { %50 = dma.hbm_to_vmem [thread:$0]  %s618_s3, 2048, %s45_s19, [#allocation6], %s516_s0, %s516_s0, %s517_s21  }
  0x34   :  { %505 = dma.done.wait [#allocation3], 128  }
  0x35   :  { %506 = vsyncadd [#allocation3], 4294967168 }
  0x36   :  { %507 = dma.done.wait [#allocation6], 2304  }
  0x37   :  { %508 = vsyncadd [#allocation6], 4294964992  ;;  %v518_v0 = vmov 0.0   ;;  %vm519_vm0 = vmmov 0   ;;  %v390_v1 = vld [vmem:[#allocation5] sm:$0xff]   ;;  %v391_v2 = vld [vmem:[#allocation5 + $0x8] sm:$0xff]   ;;  %v309_v31 = vlaneseq }
  0x38   :  { %369 = vmatprep.subr.bf16.mxu0 %v518_v0  ;;  %373 = vmatprep.mubr.msk.bf16.mxu0 %vm519_vm0, %v518_v0  ;;  %v393_v3 = vld [vmem:[#allocation7 + $0x4] ss:$8 sps:$4 sm:$0xff]   ;;  %v395_v4 = vld [vmem:[#allocation7] ss:$8 sps:$4 sm:$0xff]   ;;  %v396_v6 = vld [vmem:[#allocation7 + $0x14] ss:$8 sps:$4 sm:$0xff]  }
  0x39   :  { %370 = vmatpush3.bf16.msra.mxu0 %v390_v1  ;;  %v392_v5 = vld [vmem:[#allocation2] sm:$0xff]   ;;  %249 = vmatprep.subr.bf16.mxu1 %v393_v3  ;;  %vm101_vm1 = vcmask 261120   ;;  %v398_v7 = vld [vmem:[#allocation7 + $0x10] ss:$8 sps:$4 sm:$0xff]   ;;  %v402_v10 = vld [vmem:[#allocation7 + $0x34] ss:$8 sps:$4 sm:$0xff]  }
  0x3a   :  { %371 = vmatprep.subr.bf16.mxu0 %v518_v0  ;;  %250 = vmatpush1.bf16.msra.mxu1 %v395_v4  ;;  %v399_v8 = vld [vmem:[#allocation7 + $0x24] ss:$8 sps:$4 sm:$0xff]   ;;  %v401_v9 = vld [vmem:[#allocation7 + $0x20] ss:$8 sps:$4 sm:$0xff]   ;;  %v404_v11 = vld [vmem:[#allocation7 + $0x30] ss:$8 sps:$4 sm:$0xff]  }
  0x3b   :  { %251 = vmatprep.subr.bf16.mxu1 %v396_v6  ;;  %v405_v12 = vld [vmem:[#allocation7 + $0x44] ss:$8 sps:$4 sm:$0xff]   ;;  %v407_v13 = vld [vmem:[#allocation7 + $0x40] ss:$8 sps:$4 sm:$0xff]   ;;  %v408_v14 = vld [vmem:[#allocation7 + $0x54] ss:$8 sps:$4 sm:$0xff]  }
  0x3c   :  { %v410_v15 = vld [vmem:[#allocation7 + $0x50] ss:$8 sps:$4 sm:$0xff]   ;;  %v411_v16 = vld [vmem:[#allocation7 + $0x64] ss:$8 sps:$4 sm:$0xff]   ;;  %v413_v17 = vld [vmem:[#allocation7 + $0x60] ss:$8 sps:$4 sm:$0xff]  }
  0x3d   :  { %372 = vmatpush3.bf16.msra.mxu0 %v391_v2  ;;  %v414_v18 = vld [vmem:[#allocation7 + $0x74] ss:$8 sps:$4 sm:$0xff]   ;;  %v416_v19 = vld [vmem:[#allocation7 + $0x70] ss:$8 sps:$4 sm:$0xff]   ;;  %v520_v20 = vmov 0   ;;  %v310_v32 = vshrl.u32 %v309_v31, 7 }
  0x3e   :  { %252 = vmatpush1.bf16.msra.mxu1 %v398_v7  ;;  %281 = vmatprep.mubr.bf16.mxu1 %v520_v20  ;;  %v345_v21 = vld [vmem:[%s617_s2] ss:$0 sm:$0xff]  ;;  %s521_s2 = smov [#allocation8]  }
  0x3f   :  { %253 = vmatprep.subr.bf16.mxu1 %v399_v8  ;;  %v311_v33 = vsub.s32 0, %v310_v32  ;;  %v307_v34 = vld [vmem:[%s619_s4] sm:$0x3]  ;;  %v315_v35 = vsub.s32 1, %v310_v32  ;;  %s332_s9 = sshll.u32 %s521_s2, 4  ;;  %s333_s9 = int_to_ptr.vmem [resolvable:$true] %s332_s9 }
  0x40   :  { %374 = vmatmul.mubr.msk.bf16.vlgmr.msra.gmra.mrb[0].mxu0 %vm101_vm1, %v392_v5  ;;  %s483_s10 = scalar_lea.vmem %s333_s9, 512  ;;  %p488_p11 = scmp.lt.s32.totalorder %s333_s9, %s333_s9 }
  0x41   :  { %v312_v36 = vrot.slane %v307_v34, %v311_v33  ;;  %v316_v38 = vrot.slane %v307_v34, %v315_v35  ;;  %p484_p10 = scmp.ne.s32.totalorder %s333_s9, %s483_s10  ;;  %p489_p12 = scmp.lt.s32.totalorder %s483_s10, %s483_s10 }
  0x42   :  { %254 = vmatpush1.bf16.msra.mxu1 %v401_v9 }
  0x43   :  { %255 = vmatprep.subr.bf16.mxu1 %v402_v10  ;;  %p490_p13 = por %p489_p12, %p488_p11 }
  0x45   :  { %p491_p0 = pnand %p490_p13, %p484_p10 }
  0x46   :  { %256 = vmatpush1.bf16.msra.mxu1 %v404_v11 }
  0x47   :  { %257 = vmatprep.subr.bf16.mxu1 %v405_v12 }
  0x4a   :  { %258 = vmatpush1.bf16.msra.mxu1 %v407_v13 }
  0x4b   :  { %259 = vmatprep.subr.bf16.mxu1 %v408_v14 }
  0x4e   :  { %260 = vmatpush1.bf16.msra.mxu1 %v410_v15 }
  0x4f   :  { %261 = vmatprep.subr.bf16.mxu1 %v411_v16 }
  0x52   :  { %262 = vmatpush1.bf16.msra.mxu1 %v413_v17 }
  0x53   :  { %263 = vmatprep.subr.bf16.mxu1 %v414_v18 }
  0x56   :  { %264 = vmatpush1.bf16.msra.mxu1 %v416_v19 }
 0x113   :  { %v139_v22 = vpop.f32.mrb[0].mxu0 }
 0x114   :  { %v140_v23 = vadd.f32 %v345_v21, %v139_v22  ;;  %v375_v24 = vpop.f32.mrb[1].mxu0 }
 0x115   :  { %v142_v25 = vpop.f32.mrb[2].mxu0 }
 0x116   :  { %v143_v26 = vadd.f32 %v345_v21, %v142_v25  ;;  %v376_v27 = vpop.f32.mrb[3].mxu0  ;;  %v146_v28 = vmax.f32 %v140_v23, 0.0 }
 0x118   :  { %v147_v29 = vmax.f32 %v143_v26, 0.0 }
 0x11a   :  { %v152_v30 = vpack.c.bf16 %v147_v29, %v146_v28 }
 0x11c   :  { %282 = vmatmul.mubr.bf16.vlgmr.msra.gmra.mrb[0].mxu1 %v152_v30 }
 0x1ef   :  { %v283_v37 = vpop.f32.mrb[0].mxu1 }
 0x1f0   :  { %v285_v39 = vpop.f32.mrb[1].mxu1  ;;  %v319_v41 = vadd.f32 %v312_v36, %v283_v37 }
 0x1f1   :  { %v287_v40 = vpop.f32.mrb[2].mxu1  ;;  %v320_v43 = vadd.f32 %v316_v38, %v285_v39 }
 0x1f2   :  { %v289_v42 = vpop.f32.mrb[3].mxu1  ;;  %323 = vst [vmem:[#allocation8] sm:$0xff] %v319_v41  ;;  %v321_v44 = vadd.f32 %v312_v36, %v287_v40 }
 0x1f3   :  { %324 = vst [vmem:[#allocation8 + $0x8] sm:$0xff] %v320_v43  ;;  %v322_v45 = vadd.f32 %v316_v38, %v289_v42 }
 0x1f4   :  { %325 = vst [vmem:[#allocation8 + $0x10] sm:$0xff] %v321_v44 }
 0x1f5   :  { %326 = vst [vmem:[#allocation8 + $0x18] sm:$0xff] %v322_v45 }
 0x1f6   :  { %494 = shalt.err (!%p491_p0)
}
 0x1f7   :  { %s495_s12 = scalar_lea.hbm %s620_s5, 512 }
 0x1f8   :  { %p496_p1 = scmp.ne.s32.totalorder %s620_s5, %s495_s12  ;;  %p499_p2 = scmp.lt.u32.totalorder %s495_s12, %s620_s5 }
 0x1fa   :  { %p501_p3 = pnand %p499_p2, %p496_p1 }
 0x1fc   :  { %504 = shalt.err (!%p501_p3)
}
 0x1fd   :  { %s522_s1 = smov 256   ;;  %s523_s17 = smov 16  }
 0x1fe   :  { %338 = dma.vmem_to_hbm [thread:$0]  %s333_s9, 512, %s620_s5, [#allocation4], %s522_s1, %s522_s1, %s523_s17  }
 0x1ff   :  { %509 = dma.done.wait [#allocation4], 512  }
 0x200   :  { %510 = vsyncadd [#allocation4], 4294966784 }
 0x201   :  { %342 = vsyncpa [#allocation3], 1 }
 0x202   :  { %343 = vsyncpa [#allocation6], 1 }
 0x203   :  { %344 = vsyncpa [#allocation4], 1 }

</bundles_post_ra>
